<compile_context>
chip_gen: v7x
topology: tpu7x:2x2x1
jax: 0.10.0
libtpu: 0.0.40
codegen_flags: <defaults>
</compile_context>

<pallas_src>
import functools

import jax
import jax.numpy as jnp
from jax import lax
from jax.experimental import pallas as pl
from jax.experimental.pallas import tpu as pltpu

N_IN = 4      # Iris features
HID = 64      # hidden width
N_OUT = 3     # classes
OUT_SUB = 8   # logits padded 3 -> 8 along the sublane axis of the transposed output


def _round_up(x, m):
    return ((x + m - 1) // m) * m


def _iris_mlp_kernel(x_ref, w1_ref, b1_ref, w2_ref, b2_ref, w3t_ref, b3_ref, o_ref):
    # fc1 + relu (K = 4; Mosaic pads the contraction internally).
    h1 = jnp.dot(x_ref[...], w1_ref[...], preferred_element_type=jnp.float32)
    h1 = jnp.maximum(h1 + b1_ref[...], 0.0)
    # fc2 + relu
    h2 = jnp.dot(h1, w2_ref[...], preferred_element_type=jnp.float32)
    h2 = jnp.maximum(h2 + b2_ref[...], 0.0)
    # fc3, transposed: [8, 64] contracted with [TB, 64] -> [8, TB]
    # (lane-dense output block -> unmasked vector stores; 8 sublanes, 3 real rows).
    out_t = lax.dot_general(
        w3t_ref[...], h2,
        dimension_numbers=(((1,), (1,)), ((), ())),
        preferred_element_type=jnp.float32,
    )
    o_ref[...] = (out_t + b3_ref[...]).astype(o_ref.dtype)


@functools.partial(jax.jit, static_argnames=("block_batch",))
def iris_classifier_forward(x, params, *, block_batch=1024):
    """x: [B, 4] float32. params: dict from init_params. Returns [B, 3] logits."""
    w1, b1, w2, b2 = params["w1"], params["b1"], params["w2"], params["b2"]
    w3t_pad, b3_pad = params["w3t_pad"], params["b3_pad"]

    B = x.shape[0]

    if B <= 256:
        # Small batch: one tile covering the whole (sublane-rounded) batch.
        TB = max(_round_up(B, 8), 8)
        B_pad = TB
    else:
        # Throughput path: tile is a multiple of 128, and capped so the grid has
        # >= 2 steps (both v7x TensorCores get work; no effect on v5e/v6e).
        bb = max(_round_up(block_batch, 128), 128)
        half = _round_up((B + 1) // 2, 128)
        TB = min(bb, half)
        B_pad = _round_up(B, TB)

    # Only batch-round x when needed (no per-call feature padding pass).
    x_in = x if B_pad == B else jnp.pad(x, ((0, B_pad - B), (0, 0)))

    grid = (B_pad // TB,)

    out_t = pl.pallas_call(
        _iris_mlp_kernel,
        out_shape=jax.ShapeDtypeStruct((OUT_SUB, B_pad), jnp.float32),
        grid=grid,
        in_specs=[
            pl.BlockSpec((TB, N_IN), lambda i: (i, 0)),       # x tile (pipelined)
            pl.BlockSpec((N_IN, HID), lambda i: (0, 0)),      # w1 (VMEM-resident)
            pl.BlockSpec((1, HID), lambda i: (0, 0)),         # b1
            pl.BlockSpec((HID, HID), lambda i: (0, 0)),       # w2
            pl.BlockSpec((1, HID), lambda i: (0, 0)),         # b2
            pl.BlockSpec((OUT_SUB, HID), lambda i: (0, 0)),   # w3.T, sublane-padded
            pl.BlockSpec((OUT_SUB, 1), lambda i: (0, 0)),     # b3, sublane-padded
        ],
        out_specs=pl.BlockSpec((OUT_SUB, TB), lambda i: (0, i)),
        compiler_params=pltpu.CompilerParams(
            dimension_semantics=("parallel",),  # batch tiles shard across TCs (v7x)
        ),
    )(x_in, w1, b1, w2, b2, w3t_pad, b3_pad)

    # [8, B_pad] -> [B, 3]: strip sublane/batch padding, transpose back (cheap).
    return out_t[:N_OUT, :B].T


def init_params(key):
    """Deterministic init mimicking nn.Linear (weights stored [in, out]).

    The last layer is additionally stored pre-padded/transposed ([8, 64] / [8, 1])
    so no padding happens on the per-call path.
    """
    k1, k2, k3, k4, k5, k6 = jax.random.split(key, 6)

    def linear_init(kw, kb, fan_in, fan_out):
        # PyTorch default: U(-1/sqrt(fan_in), 1/sqrt(fan_in)) for both W and b.
        bound = 1.0 / jnp.sqrt(jnp.float32(fan_in))
        w = jax.random.uniform(kw, (fan_in, fan_out), jnp.float32, -bound, bound)
        b = jax.random.uniform(kb, (1, fan_out), jnp.float32, -bound, bound)
        return w, b

    w1, b1 = linear_init(k1, k2, N_IN, HID)
    w2, b2 = linear_init(k3, k4, HID, HID)
    w3, b3 = linear_init(k5, k6, HID, N_OUT)

    w3t_pad = jnp.zeros((OUT_SUB, HID), jnp.float32).at[:N_OUT, :].set(w3.T)
    b3_pad = jnp.zeros((OUT_SUB, 1), jnp.float32).at[:N_OUT, :].set(b3.T)

    return {
        "w1": w1, "b1": b1, "w2": w2, "b2": b2,
        "w3": w3, "b3": b3,                      # logical params (reference only)
        "w3t_pad": w3t_pad, "b3_pad": b3_pad,    # kernel-ready padded forms
    }


def reference_forward(x, p):
    h1 = jnp.maximum(x @ p["w1"] + p["b1"], 0.0)
    h2 = jnp.maximum(h1 @ p["w2"] + p["b2"], 0.0)
    return h2 @ p["w3"] + p["b3"]


if __name__ == "__main__":
    key = jax.random.PRNGKey(0)
    pkey, xkey1, xkey2 = jax.random.split(key, 3)
    params = init_params(pkey)

    # Small Iris-style batch (single-tile path).
    x_small = jax.random.normal(xkey1, (8, N_IN), dtype=jnp.float32)
    out_small = jax.block_until_ready(iris_classifier_forward(x_small, params))
    ref_small = reference_forward(x_small, params)
    assert out_small.shape == (8, N_OUT)
    assert jnp.allclose(out_small, ref_small, atol=1e-5, rtol=1e-5)

    # Larger non-multiple batch (multi-tile + batch-padding path; 2 grid steps).
    x_big = jax.random.normal(xkey2, (300, N_IN), dtype=jnp.float32)
    out_big = jax.block_until_ready(iris_classifier_forward(x_big, params))
    ref_big = reference_forward(x_big, params)
    assert out_big.shape == (300, N_OUT)
    assert jnp.allclose(out_big, ref_big, atol=1e-5, rtol=1e-5)

    print("KERNEL_OK")
</pallas_src>

<mosaic_0001>
module attributes {stable_mosaic.version = 11 : i64} {
  func.func @_iris_mlp_kernel(%arg0: i32, %arg1: memref<8x4xf32, #tpu.memory_space<vmem>>, %arg2: memref<4x64xf32, #tpu.memory_space<vmem>>, %arg3: memref<1x64xf32, #tpu.memory_space<vmem>>, %arg4: memref<64x64xf32, #tpu.memory_space<vmem>>, %arg5: memref<1x64xf32, #tpu.memory_space<vmem>>, %arg6: memref<8x64xf32, #tpu.memory_space<vmem>>, %arg7: memref<8x1xf32, #tpu.memory_space<vmem>>, %arg8: memref<8x8xf32, #tpu.memory_space<vmem>>) attributes {dimension_semantics = [#tpu.dimension_semantics<parallel>], iteration_bounds = array<i64: 1>, scalar_prefetch = 0 : i64, scratch_operands = 0 : i64, tpu.core_type = #tpu.core_type<tc>, window_params = [{transform_indices = @transform_0, window_bounds = array<i64: 8, 4>}, {pipeline_mode = #tpu.pipeline_mode<synchronous>, transform_indices = @transform_1, window_bounds = array<i64: 4, 64>}, {pipeline_mode = #tpu.pipeline_mode<synchronous>, transform_indices = @transform_2, window_bounds = array<i64: 1, 64>}, {pipeline_mode = #tpu.pipeline_mode<synchronous>, transform_indices = @transform_3, window_bounds = array<i64: 64, 64>}, {pipeline_mode = #tpu.pipeline_mode<synchronous>, transform_indices = @transform_4, window_bounds = array<i64: 1, 64>}, {pipeline_mode = #tpu.pipeline_mode<synchronous>, transform_indices = @transform_5, window_bounds = array<i64: 8, 64>}, {pipeline_mode = #tpu.pipeline_mode<synchronous>, transform_indices = @transform_6, window_bounds = array<i64: 8, 1>}, {transform_indices = @transform_7, window_bounds = array<i64: 8, 8>}]} {
    %c0 = arith.constant 0 : index
    %c0_0 = arith.constant 0 : index
    %0 = vector.load %arg1[%c0, %c0_0] : memref<8x4xf32, #tpu.memory_space<vmem>>, vector<8x4xf32>
    %c0_1 = arith.constant 0 : index
    %c0_2 = arith.constant 0 : index
    %1 = vector.load %arg2[%c0_1, %c0_2] : memref<4x64xf32, #tpu.memory_space<vmem>>, vector<4x64xf32>
    %cst = arith.constant dense<0.000000e+00> : vector<8x64xf32>
    %2 = tpu.matmul %0, %1, %cst {dimension_numbers = #tpu.dot_dimension_numbers<[1], [0], [0], [1], [0, 0, 1, 1], [], []>} : vector<8x4xf32>, vector<4x64xf32>, vector<8x64xf32> -> vector<8x64xf32>
    %c0_3 = arith.constant 0 : index
    %c0_4 = arith.constant 0 : index
    %3 = vector.load %arg3[%c0_3, %c0_4] : memref<1x64xf32, #tpu.memory_space<vmem>>, vector<1x64xf32>
    %4 = vector.broadcast %3 : vector<1x64xf32> to vector<8x64xf32>
    %5 = arith.addf %2, %4 : vector<8x64xf32>
    %cst_5 = arith.constant 0.000000e+00 : f32
    %6 = vector.broadcast %cst_5 : f32 to vector<8x64xf32>
    %7 = arith.maximumf %5, %6 : vector<8x64xf32>
    %c0_6 = arith.constant 0 : index
    %c0_7 = arith.constant 0 : index
    %8 = vector.load %arg4[%c0_6, %c0_7] : memref<64x64xf32, #tpu.memory_space<vmem>>, vector<64x64xf32>
    %cst_8 = arith.constant dense<0.000000e+00> : vector<8x64xf32>
    %9 = tpu.matmul %7, %8, %cst_8 {dimension_numbers = #tpu.dot_dimension_numbers<[1], [0], [0], [1], [0, 0, 1, 1], [], []>} : vector<8x64xf32>, vector<64x64xf32>, vector<8x64xf32> -> vector<8x64xf32>
    %c0_9 = arith.constant 0 : index
    %c0_10 = arith.constant 0 : index
    %10 = vector.load %arg5[%c0_9, %c0_10] : memref<1x64xf32, #tpu.memory_space<vmem>>, vector<1x64xf32>
    %11 = vector.broadcast %10 : vector<1x64xf32> to vector<8x64xf32>
    %12 = arith.addf %9, %11 : vector<8x64xf32>
    %cst_11 = arith.constant 0.000000e+00 : f32
    %13 = vector.broadcast %cst_11 : f32 to vector<8x64xf32>
    %14 = arith.maximumf %12, %13 : vector<8x64xf32>
    %c0_12 = arith.constant 0 : index
    %c0_13 = arith.constant 0 : index
    %15 = vector.load %arg6[%c0_12, %c0_13] : memref<8x64xf32, #tpu.memory_space<vmem>>, vector<8x64xf32>
    %cst_14 = arith.constant dense<0.000000e+00> : vector<8x8xf32>
    %16 = tpu.matmul %15, %14, %cst_14 {dimension_numbers = #tpu.dot_dimension_numbers<[1], [1], [0], [0], [0, 0, 1, 0], [], []>} : vector<8x64xf32>, vector<8x64xf32>, vector<8x8xf32> -> vector<8x8xf32>
    %c0_15 = arith.constant 0 : index
    %c0_16 = arith.constant 0 : index
    %17 = vector.load %arg7[%c0_15, %c0_16] : memref<8x1xf32, #tpu.memory_space<vmem>>, vector<8x1xf32>
    %18 = vector.broadcast %17 : vector<8x1xf32> to vector<8x8xf32>
    %19 = arith.addf %16, %18 : vector<8x8xf32>
    %c0_17 = arith.constant 0 : index
    %c0_18 = arith.constant 0 : index
    %20 = vector.load %arg8[%c0_17, %c0_18] : memref<8x8xf32, #tpu.memory_space<vmem>>, vector<8x8xf32>
    tpu.vector_store %arg8[%c0_17, %c0_18], %19 {strides = array<i32>} : memref<8x8xf32, #tpu.memory_space<vmem>>, vector<8x8xf32>,
    return
  }
  func.func @transform_0(%arg0: i32) -> (i32, i32) {
    %c0_i32 = arith.constant 0 : i32
    %c0_i32_0 = arith.constant 0 : i32
    return %arg0, %c0_i32 : i32, i32
  }
  func.func @transform_1(%arg0: i32) -> (i32, i32) {
    %c0_i32 = arith.constant 0 : i32
    %c0_i32_0 = arith.constant 0 : i32
    %c0_i32_1 = arith.constant 0 : i32
    return %c0_i32, %c0_i32_0 : i32, i32
  }
  func.func @transform_2(%arg0: i32) -> (i32, i32) {
    %c0_i32 = arith.constant 0 : i32
    %c0_i32_0 = arith.constant 0 : i32
    %c0_i32_1 = arith.constant 0 : i32
    return %c0_i32, %c0_i32_0 : i32, i32
  }
  func.func @transform_3(%arg0: i32) -> (i32, i32) {
    %c0_i32 = arith.constant 0 : i32
    %c0_i32_0 = arith.constant 0 : i32
    %c0_i32_1 = arith.constant 0 : i32
    return %c0_i32, %c0_i32_0 : i32, i32
  }
  func.func @transform_4(%arg0: i32) -> (i32, i32) {
    %c0_i32 = arith.constant 0 : i32
    %c0_i32_0 = arith.constant 0 : i32
    %c0_i32_1 = arith.constant 0 : i32
    return %c0_i32, %c0_i32_0 : i32, i32
  }
  func.func @transform_5(%arg0: i32) -> (i32, i32) {
    %c0_i32 = arith.constant 0 : i32
    %c0_i32_0 = arith.constant 0 : i32
    %c0_i32_1 = arith.constant 0 : i32
    return %c0_i32, %c0_i32_0 : i32, i32
  }
  func.func @transform_6(%arg0: i32) -> (i32, i32) {
    %c0_i32 = arith.constant 0 : i32
    %c0_i32_0 = arith.constant 0 : i32
    %c0_i32_1 = arith.constant 0 : i32
    return %c0_i32, %c0_i32_0 : i32, i32
  }
  func.func @transform_7(%arg0: i32) -> (i32, i32) {
    %c0_i32 = arith.constant 0 : i32
    %c0_i32_0 = arith.constant 0 : i32
    return %c0_i32, %arg0 : i32, i32
  }
}

</mosaic_0001>

<bundles_post_ra>
// kernel: iris_classifier_forward.1
= control target key start
LH: loop header
LB: loop body
LE: loop exit
PB: predicated region body
PF: predicated region fallthrough
CT: control target
= control target key end

     0   :  { %12 = vsyncpa [#allocation3], 0  ;;  %s401_s24 = smov [#allocation2]   ;;  %s484_s0 = inlined_call_operand.vmem [shape: f32[8,4], index: 0, kind: input, shape index: {}]   ;;  %s485_s1 = inlined_call_operand.vmem [shape: f32[4,64], index: 1, kind: input, shape index: {}]   ;;  %s486_s2 = inlined_call_operand.vmem [shape: f32[1,64], index: 2, kind: input, shape index: {}]   ;;  %s487_s3 = inlined_call_operand.hbm [shape: f32[64,64], index: 3, kind: input, shape index: {}]   ;;  %s488_s4 = inlined_call_operand.vmem [shape: f32[1,64], index: 4, kind: input, shape index: {}]   ;;  %s489_s5 = inlined_call_operand.vmem [shape: f32[8,64], index: 5, kind: input, shape index: {}]   ;;  %s490_s6 = inlined_call_operand.vmem [shape: f32[8,1], index: 6, kind: input, shape index: {}]   ;;  %s491_s7 = inlined_call_operand.vmem [shape: f32[8,8], index: 7, kind: output, shape index: {}]  }
   0x1   :  { %s24_s25 = sshll.u32 %s401_s24, 4  ;;  %s377_s28 = scalar_lea.hbm %s487_s3, 1024  ;;  %s25_s25 = int_to_ptr.vmem [resolvable:$true] %s24_s25 }
   0x2   :  { %p378_p0 = scmp.ne.s32.totalorder %s487_s3, %s377_s28  ;;  %p381_p1 = scmp.lt.u32.totalorder %s377_s28, %s487_s3 }
   0x4   :  { %p383_p2 = pnand %p381_p1, %p378_p0 }
   0x6   :  { %386 = shalt.err (!%p383_p2)
}
   0x7   :  { %s387_s10 = scalar_lea.vmem %s25_s25, 1024  ;;  %p392_p4 = scmp.lt.s32.totalorder %s25_s25, %s25_s25 }
   0x8   :  { %p388_p3 = scmp.ne.s32.totalorder %s25_s25, %s387_s10  ;;  %p393_p5 = scmp.lt.s32.totalorder %s387_s10, %s387_s10 }
   0xa   :  { %p394_p6 = por %p393_p5, %p392_p4 }
   0xc   :  { %p395_p7 = pnand %p394_p6, %p388_p3 }
   0xe   :  { %398 = shalt.err (!%p395_p7)
}
   0xf   :  { %s402_s11 = smov 128   ;;  %s403_s12 = smov 8  }
  0x10   :  { %30 = dma.hbm_to_vmem [thread:$0]  %s487_s3, 1024, %s25_s25, [#allocation3], %s402_s11, %s402_s11, %s403_s12  }
  0x11   :  { %399 = dma.done.wait [#allocation3], 1024  }
  0x12   :  { %400 = vsyncadd [#allocation3], 4294966272  ;;  %v404_v0 = vmov 0.0   ;;  %vm405_vm0 = vmmov 0   ;;  %v406_v1 = vmov 0.0|0.0   ;;  %vm53_vm1 = vcmask 1043456  }
  0x13   :  { %328 = vmatprep.subr.mxu0 %v404_v0  ;;  %330 = vmatprep.mubr.msk.f32.mxu0 %vm405_vm0, %v404_v0  ;;  %vm49_vm2 = vcmask 31744   ;;  %v41_v2 = vld [vmem:[%s485_s1] sm:$0xf]  ;;  %v129_v5 = vld [vmem:[#allocation2 + $0x8] sm:$0xff]  ;;  %v130_v6 = vld [vmem:[#allocation2 + $0x10] sm:$0xff]  ;;  %vm143_vm3 = vcmask 523264  }
  0x14   :  { %357 = vmatprep.subr.bf16.mxu1 %v406_v1  ;;  %349 = vmatprep.mubr.msk.f32.mxu1 %vm405_vm0, %v404_v0  ;;  %v40_v3 = vld [vmem:[%s484_s0] sm:$0xff]  ;;  %v131_v7 = vld [vmem:[#allocation2 + $0x18] sm:$0xff]  ;;  %v133_v11 = vld [vmem:[#allocation2 + $0x28] sm:$0xff]  ;;  %v407_v22 = vmov 0   ;;  %vm301_vm4 = vcmask 64512  }
  0x15   :  { %v128_v4 = vld [vmem:[#allocation2] sm:$0xff]  ;;  %329 = vmatpush3.msk.msra.mxu0 %vm53_vm1, %v41_v2  ;;  %v361_v9 = vpack.c.bf16 %v131_v7, %v130_v6  ;;  %v134_v13 = vld [vmem:[#allocation2 + $0x30] sm:$0xff]  ;;  %v135_v14 = vld [vmem:[#allocation2 + $0x38] sm:$0xff]  ;;  %376 = vset.pattern.permute.xlu0 %v407_v22 }
  0x16   :  { %331 = vmatmul.mubr.msk.f32.vlgmr.msra.gmra.mrb[0].mxu0 %vm49_vm2, %v40_v3  ;;  %v358_v8 = vpack.c.bf16 %v129_v5, %v128_v4  ;;  %352 = vmatprep.subr.mxu0 %v404_v0  ;;  %v132_v10 = vld [vmem:[#allocation2 + $0x20] sm:$0xff]  ;;  %v367_v15 = vpack.c.bf16 %v135_v14, %v134_v13 }
  0x17   :  { %354 = vmatprep.mubr.msk.f32.mxu0 %vm405_vm0, %v404_v0  ;;  %v364_v12 = vpack.c.bf16 %v133_v11, %v132_v10  ;;  %v308_v16 = vld [vmem:[%s486_s2] ss:$0 sm:$0xff] }
  0x18   :  { %359 = vmatpush3.bf16.msra.mxu1 %v358_v8  ;;  %v219_v21 = vld [vmem:[%s490_s6] sm:$0xff] }
  0x19   :  { %360 = vmatprep.subr.bf16.mxu1 %v406_v1  ;;  %222 = vperm.xlu0 %376, %v219_v21   ;;  %v311_v23 = vld [vmem:[%s488_s4] ss:$0 sm:$0xff] }
  0x1a   :  { %v218_v28 = vld [vmem:[%s489_s5] sm:$0xff] }
  0x1c   :  { %362 = vmatpush3.bf16.msra.mxu1 %v361_v9 }
  0x1d   :  { %363 = vmatprep.subr.bf16.mxu1 %v406_v1 }
  0x20   :  { %365 = vmatpush3.bf16.msra.mxu1 %v364_v12 }
  0x21   :  { %366 = vmatprep.subr.bf16.mxu1 %v406_v1 }
  0x24   :  { %368 = vmatpush3.bf16.msra.mxu1 %v367_v15 }
  0x98   :  { %v223_v29 = vpop.permute.xlu0 %222 }
  0xe9   :  { %v123_v17 = vpop.f32.mrb[0].mxu0 }
  0xea   :  { %v124_v18 = vadd.f32 %v308_v16, %v123_v17  ;;  %v332_v19 = vpop.f32.mrb[1].mxu0 }
  0xec   :  { %v127_v20 = vmax.f32 %v124_v18, 0.0 }
  0xee   :  { %350 = vmatmul.mubr.msk.f32.vlgmr.msra.gmra.mrb[0].mxu1 %vm143_vm3, %v127_v20 }
 0x1c1   :  { %v213_v24 = vpop.f32.mrb[0].mxu1 }
 0x1c2   :  { %v214_v25 = vadd.f32 %v311_v23, %v213_v24  ;;  %v351_v26 = vpop.f32.mrb[1].mxu1 }
 0x1c4   :  { %v217_v27 = vmax.f32 %v214_v25, 0.0 }
 0x1c6   :  { %353 = vmatpush3.xpose.msk.msra.mxu0 %vm143_vm3, %v217_v27 }
 0x1c9   :  { %355 = vmatmul.mubr.msk.f32.vlgmr.msra.gmra.mrb[2].mxu0 %vm143_vm3, %v218_v28 }
 0x29c   :  { %v297_v30 = vpop.f32.mrb[2].mxu0 }
 0x29d   :  { %v298_v31 = vadd.f32 %v297_v30, %v223_v29  ;;  %v356_v32 = vpop.f32.mrb[3].mxu0 }
 0x29f   :  { %302 = vst.msk [vmem:[%s491_s7] sm:$0xff] %vm301_vm4, %v298_v31 }
 0x2a0   :  { %307 = vsyncpa [#allocation3], 1 }

</bundles_post_ra>
